<compile_context>
chip_gen: v5e
topology: v5e:2x2
jax: 0.10.0
libtpu: 0.0.40
codegen_flags: <defaults>
</compile_context>

<pallas_src>
import functools
import math

import jax
import jax.numpy as jnp
from jax import lax
from jax.experimental import pallas as pl
from jax.experimental.pallas import tpu as pltpu


def _mha_kernel(xq_ref, xkv_ref, wqkv_ref, wot_ref, o_ref, *,
                num_heads, scale, causal):
    """One (batch, query-tile) grid step.

    xq_ref   : (1, Tq, E)  query rows of this tile
    xkv_ref  : (1, S,  E)  full sequence (keys/values source)
    wqkv_ref : (3, E, E)   stacked Wq/Wk/Wv, already (in, out) layout, resident
    wot_ref  : (E, E)      Wo, already (in, out) layout, resident
    o_ref    : (1, Tq, E)  output rows of this tile
    """
    Tq = xq_ref.shape[1]
    S = xkv_ref.shape[1]
    E = xq_ref.shape[2]
    hd = E // num_heads

    xq = xq_ref[0]          # (Tq, E), input dtype (no upcast)
    xkv = xkv_ref[0]        # (S,  E)

    # Fused, E-wide projections; accumulate in f32 on the MXU.
    q = jnp.dot(xq, wqkv_ref[0], preferred_element_type=jnp.float32) * scale
    k = jnp.dot(xkv, wqkv_ref[1], preferred_element_type=jnp.float32)
    v = jnp.dot(xkv, wqkv_ref[2], preferred_element_type=jnp.float32)
    # Keep MXU operands in the input dtype (no-op for f32, downcast for bf16).
    q = q.astype(xq.dtype)
    k = k.astype(xq.dtype)
    v = v.astype(xq.dtype)

    # Additive causal bias: built once per query tile, shared across heads.
    if causal:
        q0 = pl.program_id(1) * Tq
        row = lax.broadcasted_iota(jnp.int32, (Tq, S), 0) + q0
        col = lax.broadcasted_iota(jnp.int32, (Tq, S), 1)
        bias = jnp.where(col <= row, 0.0, -1e30).astype(jnp.float32)

    head_outs = []
    for h in range(num_heads):                       # static trace-time loop
        sl = slice(h * hd, (h + 1) * hd)
        qh = q[:, sl]                                # (Tq, hd)
        kh = k[:, sl]                                # (S,  hd)
        vh = v[:, sl]                                # (S,  hd)

        # scores: contract head_dim of both operands (no explicit k.T).
        s = lax.dot_general(qh, kh, (((1,), (1,)), ((), ())),
                            preferred_element_type=jnp.float32)  # (Tq, S)
        if causal:
            s = s + bias

        m = jnp.max(s, axis=-1, keepdims=True)
        p = jnp.exp(s - m)
        p = p * pl.reciprocal(jnp.sum(p, axis=-1, keepdims=True), approx=True)

        head_outs.append(
            jnp.dot(p.astype(vh.dtype), vh,
                    preferred_element_type=jnp.float32))          # (Tq, hd)

    y = jnp.concatenate(head_outs, axis=-1).astype(xq.dtype)      # (Tq, E)

    # Single E-wide output projection; write the output block exactly once.
    out = jnp.dot(y, wot_ref[...], preferred_element_type=jnp.float32)
    o_ref[0] = out.astype(o_ref.dtype)


def mha_forward(x, wq, wk, wv, wo, *, num_heads, is_causal, q_tile=None):
    B, S, E = x.shape
    assert E % num_heads == 0
    hd = E // num_heads
    scale = 1.0 / math.sqrt(hd)

    # Query-tile size: full sequence for small S, else 128-row tiles.
    if q_tile is None:
        q_tile = S if S <= 128 else 128
    if S % q_tile != 0:
        q_tile = S
    n_q = S // q_tile

    # Pre-transpose weights (hoisted out of the kernel) to (in, out) layout and
    # stack Q/K/V projections so they ride in one resident VMEM block.
    w_qkv = jnp.stack([wq.T, wk.T, wv.T], axis=0)    # (3, E, E)
    wo_t = wo.T                                      # (E, E)

    kernel = functools.partial(
        _mha_kernel, num_heads=num_heads, scale=scale, causal=is_causal)

    return pl.pallas_call(
        kernel,
        out_shape=jax.ShapeDtypeStruct((B, S, E), x.dtype),
        grid=(B, n_q),
        in_specs=[
            pl.BlockSpec((1, q_tile, E), lambda b, qi: (b, qi, 0)),  # query rows
            pl.BlockSpec((1, S, E), lambda b, qi: (b, 0, 0)),        # kv rows
            pl.BlockSpec((3, E, E), lambda b, qi: (0, 0, 0)),        # Wq/Wk/Wv (resident)
            pl.BlockSpec((E, E), lambda b, qi: (0, 0)),              # Wo (resident)
        ],
        out_specs=pl.BlockSpec((1, q_tile, E), lambda b, qi: (b, qi, 0)),
        compiler_params=pltpu.CompilerParams(
            dimension_semantics=("parallel", "parallel")),
    )(x, x, w_qkv, wo_t)


def mha_reference(x, wq, wk, wv, wo, *, num_heads, is_causal):
    """Pure-JAX reference matching torch semantics (eval mode, no masks)."""
    B, S, E = x.shape
    hd = E // num_heads
    q = (x @ wq.T).reshape(B, S, num_heads, hd).transpose(0, 2, 1, 3)
    k = (x @ wk.T).reshape(B, S, num_heads, hd).transpose(0, 2, 1, 3)
    v = (x @ wv.T).reshape(B, S, num_heads, hd).transpose(0, 2, 1, 3)
    s = jnp.einsum("bhqd,bhkd->bhqk", q, k) / math.sqrt(hd)
    if is_causal:
        mask = jnp.tril(jnp.ones((S, S), dtype=bool))
        s = jnp.where(mask[None, None], s, -jnp.inf)
    p = jax.nn.softmax(s, axis=-1)
    y = jnp.einsum("bhqk,bhkd->bhqd", p, v)
    y = y.transpose(0, 2, 1, 3).reshape(B, S, E)
    return y @ wo.T


if __name__ == "__main__":
    # Small shapes consistent with the module's forward:
    # batch=2, seq=8, embedding_dim=32, num_heads=4 (head_dim=8).
    B, S, E, H = 2, 8, 32, 4

    key = jax.random.PRNGKey(0)
    kx, kq, kk, kv, ko = jax.random.split(key, 5)

    x = jax.random.normal(kx, (B, S, E), dtype=jnp.float32)
    # Deterministic weight init (torch Linear default-ish: uniform +/- 1/sqrt(E)).
    bound = 1.0 / math.sqrt(E)
    wq = jax.random.uniform(kq, (E, E), jnp.float32, -bound, bound)
    wk = jax.random.uniform(kk, (E, E), jnp.float32, -bound, bound)
    wv = jax.random.uniform(kv, (E, E), jnp.float32, -bound, bound)
    wo = jax.random.uniform(ko, (E, E), jnp.float32, -bound, bound)

    ok = True
    for is_causal in (True, False):
        out = mha_forward(x, wq, wk, wv, wo, num_heads=H, is_causal=is_causal)
        out = jax.block_until_ready(out)
        ref = mha_reference(x, wq, wk, wv, wo, num_heads=H, is_causal=is_causal)
        assert out.shape == (B, S, E)
        # Tolerance accounts for the approx (EUP) reciprocal in the softmax.
        ok = ok and bool(jnp.allclose(out, ref, atol=5e-3, rtol=5e-3))

    assert ok, "mismatch vs reference"
    print("KERNEL_OK")
</pallas_src>

<mosaic_0001>
module attributes {stable_mosaic.version = 11 : i64} {
  func.func @_mha_kernel(%arg0: i32, %arg1: i32, %arg2: memref<1x8x32xf32, #tpu.memory_space<vmem>>, %arg3: memref<1x8x32xf32, #tpu.memory_space<vmem>>, %arg4: memref<3x32x32xf32, #tpu.memory_space<vmem>>, %arg5: memref<32x32xf32, #tpu.memory_space<vmem>>, %arg6: memref<1x8x32xf32, #tpu.memory_space<vmem>>) attributes {dimension_semantics = [#tpu.dimension_semantics<parallel>, #tpu.dimension_semantics<parallel>], iteration_bounds = array<i64: 2, 1>, scalar_prefetch = 0 : i64, scratch_operands = 0 : i64, tpu.core_type = #tpu.core_type<tc>, window_params = [{transform_indices = @transform_0, window_bounds = array<i64: 1, 8, 32>}, {transform_indices = @transform_1, window_bounds = array<i64: 1, 8, 32>}, {pipeline_mode = #tpu.pipeline_mode<synchronous>, transform_indices = @transform_2, window_bounds = array<i64: 3, 32, 32>}, {pipeline_mode = #tpu.pipeline_mode<synchronous>, transform_indices = @transform_3, window_bounds = array<i64: 32, 32>}, {transform_indices = @transform_4, window_bounds = array<i64: 1, 8, 32>}]} {
    %c0 = arith.constant 0 : index
    %c0_0 = arith.constant 0 : index
    %c0_1 = arith.constant 0 : index
    %0 = vector.load %arg2[%c0, %c0_0, %c0_1] : memref<1x8x32xf32, #tpu.memory_space<vmem>>, vector<1x8x32xf32>
    %1 = vector.shape_cast %0 : vector<1x8x32xf32> to vector<8x32xf32>
    %c0_2 = arith.constant 0 : index
    %c0_3 = arith.constant 0 : index
    %c0_4 = arith.constant 0 : index
    %2 = vector.load %arg3[%c0_2, %c0_3, %c0_4] : memref<1x8x32xf32, #tpu.memory_space<vmem>>, vector<1x8x32xf32>
    %3 = vector.shape_cast %2 : vector<1x8x32xf32> to vector<8x32xf32>
    %c0_5 = arith.constant 0 : index
    %c0_6 = arith.constant 0 : index
    %c0_7 = arith.constant 0 : index
    %4 = vector.load %arg4[%c0_5, %c0_6, %c0_7] : memref<3x32x32xf32, #tpu.memory_space<vmem>>, vector<1x32x32xf32>
    %5 = vector.shape_cast %4 : vector<1x32x32xf32> to vector<32x32xf32>
    %cst = arith.constant dense<0.000000e+00> : vector<8x32xf32>
    %6 = tpu.matmul %1, %5, %cst {dimension_numbers = #tpu.dot_dimension_numbers<[1], [0], [0], [1], [0, 0, 1, 1], [], []>} : vector<8x32xf32>, vector<32x32xf32>, vector<8x32xf32> -> vector<8x32xf32>
    %cst_8 = arith.constant 0.353553385 : f32
    %7 = vector.broadcast %cst_8 : f32 to vector<8x32xf32>
    %8 = arith.mulf %6, %7 : vector<8x32xf32>
    %c1 = arith.constant 1 : index
    %c0_9 = arith.constant 0 : index
    %c0_10 = arith.constant 0 : index
    %9 = vector.load %arg4[%c1, %c0_9, %c0_10] : memref<3x32x32xf32, #tpu.memory_space<vmem>>, vector<1x32x32xf32>
    %10 = vector.shape_cast %9 : vector<1x32x32xf32> to vector<32x32xf32>
    %cst_11 = arith.constant dense<0.000000e+00> : vector<8x32xf32>
    %11 = tpu.matmul %3, %10, %cst_11 {dimension_numbers = #tpu.dot_dimension_numbers<[1], [0], [0], [1], [0, 0, 1, 1], [], []>} : vector<8x32xf32>, vector<32x32xf32>, vector<8x32xf32> -> vector<8x32xf32>
    %c2 = arith.constant 2 : index
    %c0_12 = arith.constant 0 : index
    %c0_13 = arith.constant 0 : index
    %12 = vector.load %arg4[%c2, %c0_12, %c0_13] : memref<3x32x32xf32, #tpu.memory_space<vmem>>, vector<1x32x32xf32>
    %13 = vector.shape_cast %12 : vector<1x32x32xf32> to vector<32x32xf32>
    %cst_14 = arith.constant dense<0.000000e+00> : vector<8x32xf32>
    %14 = tpu.matmul %3, %13, %cst_14 {dimension_numbers = #tpu.dot_dimension_numbers<[1], [0], [0], [1], [0, 0, 1, 1], [], []>} : vector<8x32xf32>, vector<32x32xf32>, vector<8x32xf32> -> vector<8x32xf32>
    %c8_i32 = arith.constant 8 : i32
    %15 = arith.muli %arg1, %c8_i32 : i32
    %16 = tpu.iota {dimensions = array<i32: 0>} : vector<8x8xi32>
    %17 = vector.broadcast %15 : i32 to vector<8x8xi32>
    %18 = arith.addi %16, %17 : vector<8x8xi32>
    %19 = tpu.iota {dimensions = array<i32: 1>} : vector<8x8xi32>
    %20 = arith.cmpi sle, %19, %18 : vector<8x8xi32>
    %cst_15 = arith.constant 0.000000e+00 : f32
    %cst_16 = arith.constant -1.000000e+30 : f32
    %21 = vector.broadcast %cst_15 : f32 to vector<8x8xf32>
    %22 = vector.broadcast %cst_16 : f32 to vector<8x8xf32>
    %23 = arith.select %20, %21, %22 : vector<8x8xi1>, vector<8x8xf32>
    %24 = vector.extract_strided_slice %8 {offsets = [0, 0], sizes = [8, 8], strides = [1, 1]} : vector<8x32xf32> to vector<8x8xf32>
    %25 = vector.extract_strided_slice %11 {offsets = [0, 0], sizes = [8, 8], strides = [1, 1]} : vector<8x32xf32> to vector<8x8xf32>
    %26 = vector.extract_strided_slice %14 {offsets = [0, 0], sizes = [8, 8], strides = [1, 1]} : vector<8x32xf32> to vector<8x8xf32>
    %cst_17 = arith.constant dense<0.000000e+00> : vector<8x8xf32>
    %27 = tpu.matmul %24, %25, %cst_17 {dimension_numbers = #tpu.dot_dimension_numbers<[1], [1], [0], [0], [0, 0, 1, 0], [], []>} : vector<8x8xf32>, vector<8x8xf32>, vector<8x8xf32> -> vector<8x8xf32>
    %28 = arith.addf %27, %23 : vector<8x8xf32>
    %cst_18 = arith.constant dense<0xFF800000> : vector<8xf32>
    %29 = vector.multi_reduction <maximumf>, %28, %cst_18 [1] : vector<8x8xf32> to vector<8xf32>
    %30 = vector.shape_cast %29 : vector<8xf32> to vector<8x1xf32>
    %31 = vector.broadcast %30 : vector<8x1xf32> to vector<8x8xf32>
    %32 = arith.subf %28, %31 : vector<8x8xf32>
    %33 = math.exp %32 : vector<8x8xf32>
    %cst_19 = arith.constant dense<0.000000e+00> : vector<8xf32>
    %34 = vector.multi_reduction <add>, %33, %cst_19 [1] : vector<8x8xf32> to vector<8xf32>
    %35 = vector.shape_cast %34 : vector<8xf32> to vector<8x1xf32>
    %36 = tpu.reciprocal %35 {approx = true} : vector<8x1xf32> -> vector<8x1xf32>
    %37 = vector.broadcast %36 : vector<8x1xf32> to vector<8x8xf32>
    %38 = arith.mulf %33, %37 : vector<8x8xf32>
    %cst_20 = arith.constant dense<0.000000e+00> : vector<8x8xf32>
    %39 = tpu.matmul %38, %26, %cst_20 {dimension_numbers = #tpu.dot_dimension_numbers<[1], [0], [0], [1], [0, 0, 1, 1], [], []>} : vector<8x8xf32>, vector<8x8xf32>, vector<8x8xf32> -> vector<8x8xf32>
    %40 = vector.extract_strided_slice %8 {offsets = [0, 8], sizes = [8, 8], strides = [1, 1]} : vector<8x32xf32> to vector<8x8xf32>
    %41 = vector.extract_strided_slice %11 {offsets = [0, 8], sizes = [8, 8], strides = [1, 1]} : vector<8x32xf32> to vector<8x8xf32>
    %42 = vector.extract_strided_slice %14 {offsets = [0, 8], sizes = [8, 8], strides = [1, 1]} : vector<8x32xf32> to vector<8x8xf32>
    %cst_21 = arith.constant dense<0.000000e+00> : vector<8x8xf32>
    %43 = tpu.matmul %40, %41, %cst_21 {dimension_numbers = #tpu.dot_dimension_numbers<[1], [1], [0], [0], [0, 0, 1, 0], [], []>} : vector<8x8xf32>, vector<8x8xf32>, vector<8x8xf32> -> vector<8x8xf32>
    %44 = arith.addf %43, %23 : vector<8x8xf32>
    %cst_22 = arith.constant dense<0xFF800000> : vector<8xf32>
    %45 = vector.multi_reduction <maximumf>, %44, %cst_22 [1] : vector<8x8xf32> to vector<8xf32>
    %46 = vector.shape_cast %45 : vector<8xf32> to vector<8x1xf32>
    %47 = vector.broadcast %46 : vector<8x1xf32> to vector<8x8xf32>
    %48 = arith.subf %44, %47 : vector<8x8xf32>
    %49 = math.exp %48 : vector<8x8xf32>
    %cst_23 = arith.constant dense<0.000000e+00> : vector<8xf32>
    %50 = vector.multi_reduction <add>, %49, %cst_23 [1] : vector<8x8xf32> to vector<8xf32>
    %51 = vector.shape_cast %50 : vector<8xf32> to vector<8x1xf32>
    %52 = tpu.reciprocal %51 {approx = true} : vector<8x1xf32> -> vector<8x1xf32>
    %53 = vector.broadcast %52 : vector<8x1xf32> to vector<8x8xf32>
    %54 = arith.mulf %49, %53 : vector<8x8xf32>
    %cst_24 = arith.constant dense<0.000000e+00> : vector<8x8xf32>
    %55 = tpu.matmul %54, %42, %cst_24 {dimension_numbers = #tpu.dot_dimension_numbers<[1], [0], [0], [1], [0, 0, 1, 1], [], []>} : vector<8x8xf32>, vector<8x8xf32>, vector<8x8xf32> -> vector<8x8xf32>
    %56 = vector.extract_strided_slice %8 {offsets = [0, 16], sizes = [8, 8], strides = [1, 1]} : vector<8x32xf32> to vector<8x8xf32>
    %57 = vector.extract_strided_slice %11 {offsets = [0, 16], sizes = [8, 8], strides = [1, 1]} : vector<8x32xf32> to vector<8x8xf32>
    %58 = vector.extract_strided_slice %14 {offsets = [0, 16], sizes = [8, 8], strides = [1, 1]} : vector<8x32xf32> to vector<8x8xf32>
    %cst_25 = arith.constant dense<0.000000e+00> : vector<8x8xf32>
    %59 = tpu.matmul %56, %57, %cst_25 {dimension_numbers = #tpu.dot_dimension_numbers<[1], [1], [0], [0], [0, 0, 1, 0], [], []>} : vector<8x8xf32>, vector<8x8xf32>, vector<8x8xf32> -> vector<8x8xf32>
    %60 = arith.addf %59, %23 : vector<8x8xf32>
    %cst_26 = arith.constant dense<0xFF800000> : vector<8xf32>
    %61 = vector.multi_reduction <maximumf>, %60, %cst_26 [1] : vector<8x8xf32> to vector<8xf32>
    %62 = vector.shape_cast %61 : vector<8xf32> to vector<8x1xf32>
    %63 = vector.broadcast %62 : vector<8x1xf32> to vector<8x8xf32>
    %64 = arith.subf %60, %63 : vector<8x8xf32>
    %65 = math.exp %64 : vector<8x8xf32>
    %cst_27 = arith.constant dense<0.000000e+00> : vector<8xf32>
    %66 = vector.multi_reduction <add>, %65, %cst_27 [1] : vector<8x8xf32> to vector<8xf32>
    %67 = vector.shape_cast %66 : vector<8xf32> to vector<8x1xf32>
    %68 = tpu.reciprocal %67 {approx = true} : vector<8x1xf32> -> vector<8x1xf32>
    %69 = vector.broadcast %68 : vector<8x1xf32> to vector<8x8xf32>
    %70 = arith.mulf %65, %69 : vector<8x8xf32>
    %cst_28 = arith.constant dense<0.000000e+00> : vector<8x8xf32>
    %71 = tpu.matmul %70, %58, %cst_28 {dimension_numbers = #tpu.dot_dimension_numbers<[1], [0], [0], [1], [0, 0, 1, 1], [], []>} : vector<8x8xf32>, vector<8x8xf32>, vector<8x8xf32> -> vector<8x8xf32>
    %72 = vector.extract_strided_slice %8 {offsets = [0, 24], sizes = [8, 8], strides = [1, 1]} : vector<8x32xf32> to vector<8x8xf32>
    %73 = vector.extract_strided_slice %11 {offsets = [0, 24], sizes = [8, 8], strides = [1, 1]} : vector<8x32xf32> to vector<8x8xf32>
    %74 = vector.extract_strided_slice %14 {offsets = [0, 24], sizes = [8, 8], strides = [1, 1]} : vector<8x32xf32> to vector<8x8xf32>
    %cst_29 = arith.constant dense<0.000000e+00> : vector<8x8xf32>
    %75 = tpu.matmul %72, %73, %cst_29 {dimension_numbers = #tpu.dot_dimension_numbers<[1], [1], [0], [0], [0, 0, 1, 0], [], []>} : vector<8x8xf32>, vector<8x8xf32>, vector<8x8xf32> -> vector<8x8xf32>
    %76 = arith.addf %75, %23 : vector<8x8xf32>
    %cst_30 = arith.constant dense<0xFF800000> : vector<8xf32>
    %77 = vector.multi_reduction <maximumf>, %76, %cst_30 [1] : vector<8x8xf32> to vector<8xf32>
    %78 = vector.shape_cast %77 : vector<8xf32> to vector<8x1xf32>
    %79 = vector.broadcast %78 : vector<8x1xf32> to vector<8x8xf32>
    %80 = arith.subf %76, %79 : vector<8x8xf32>
    %81 = math.exp %80 : vector<8x8xf32>
    %cst_31 = arith.constant dense<0.000000e+00> : vector<8xf32>
    %82 = vector.multi_reduction <add>, %81, %cst_31 [1] : vector<8x8xf32> to vector<8xf32>
    %83 = vector.shape_cast %82 : vector<8xf32> to vector<8x1xf32>
    %84 = tpu.reciprocal %83 {approx = true} : vector<8x1xf32> -> vector<8x1xf32>
    %85 = vector.broadcast %84 : vector<8x1xf32> to vector<8x8xf32>
    %86 = arith.mulf %81, %85 : vector<8x8xf32>
    %cst_32 = arith.constant dense<0.000000e+00> : vector<8x8xf32>
    %87 = tpu.matmul %86, %74, %cst_32 {dimension_numbers = #tpu.dot_dimension_numbers<[1], [0], [0], [1], [0, 0, 1, 1], [], []>} : vector<8x8xf32>, vector<8x8xf32>, vector<8x8xf32> -> vector<8x8xf32>
    %88 = tpu.concatenate %39, %55, %71, %87 in 1 : vector<8x8xf32>, vector<8x8xf32>, vector<8x8xf32>, vector<8x8xf32> -> vector<8x32xf32>
    %c0_33 = arith.constant 0 : index
    %c0_34 = arith.constant 0 : index
    %89 = vector.load %arg5[%c0_33, %c0_34] : memref<32x32xf32, #tpu.memory_space<vmem>>, vector<32x32xf32>
    %cst_35 = arith.constant dense<0.000000e+00> : vector<8x32xf32>
    %90 = tpu.matmul %88, %89, %cst_35 {dimension_numbers = #tpu.dot_dimension_numbers<[1], [0], [0], [1], [0, 0, 1, 1], [], []>} : vector<8x32xf32>, vector<32x32xf32>, vector<8x32xf32> -> vector<8x32xf32>
    %c0_36 = arith.constant 0 : index
    %c0_37 = arith.constant 0 : index
    %c0_38 = arith.constant 0 : index
    %91 = vector.load %arg6[%c0_36, %c0_37, %c0_38] : memref<1x8x32xf32, #tpu.memory_space<vmem>>, vector<1x8x32xf32>
    %92 = vector.shape_cast %91 : vector<1x8x32xf32> to vector<8x32xf32>
    %93 = vector.shape_cast %90 : vector<8x32xf32> to vector<1x8x32xf32>
    tpu.vector_store %arg6[%c0_36, %c0_37, %c0_38], %93 {strides = array<i32>} : memref<1x8x32xf32, #tpu.memory_space<vmem>>, vector<1x8x32xf32>,
    return
  }
  func.func @transform_0(%arg0: i32, %arg1: i32) -> (i32, i32, i32) {
    %c0_i32 = arith.constant 0 : i32
    %c0_i32_0 = arith.constant 0 : i32
    return %arg0, %arg1, %c0_i32 : i32, i32, i32
  }
  func.func @transform_1(%arg0: i32, %arg1: i32) -> (i32, i32, i32) {
    %c0_i32 = arith.constant 0 : i32
    %c0_i32_0 = arith.constant 0 : i32
    %c0_i32_1 = arith.constant 0 : i32
    return %arg0, %c0_i32, %c0_i32_0 : i32, i32, i32
  }
  func.func @transform_2(%arg0: i32, %arg1: i32) -> (i32, i32, i32) {
    %c0_i32 = arith.constant 0 : i32
    %c0_i32_0 = arith.constant 0 : i32
    %c0_i32_1 = arith.constant 0 : i32
    %c0_i32_2 = arith.constant 0 : i32
    return %c0_i32, %c0_i32_0, %c0_i32_1 : i32, i32, i32
  }
  func.func @transform_3(%arg0: i32, %arg1: i32) -> (i32, i32) {
    %c0_i32 = arith.constant 0 : i32
    %c0_i32_0 = arith.constant 0 : i32
    %c0_i32_1 = arith.constant 0 : i32
    return %c0_i32, %c0_i32_0 : i32, i32
  }
  func.func @transform_4(%arg0: i32, %arg1: i32) -> (i32, i32, i32) {
    %c0_i32 = arith.constant 0 : i32
    %c0_i32_0 = arith.constant 0 : i32
    return %arg0, %arg1, %c0_i32 : i32, i32, i32
  }
}

</mosaic_0001>

<bundles_post_ra>
// kernel: tpu_custom_call.1
= control target key start
LH: loop header
LB: loop body
LE: loop exit
PB: predicated region body
PF: predicated region fallthrough
CT: control target
= control target key end

     0   :  { %s1438_s0 = inlined_call_operand.hbm [shape: f32[2,8,32], index: 0, kind: input, shape index: {}]   ;;  %s1439_s1 = inlined_call_operand.hbm [shape: f32[2,8,32], index: 1, kind: input, shape index: {}]   ;;  %s1440_s2 = inlined_call_operand.hbm [shape: f32[3,32,32], index: 2, kind: input, shape index: {}]   ;;  %s1441_s3 = inlined_call_operand.hbm [shape: f32[32,32], index: 3, kind: input, shape index: {}]   ;;  %s1442_s4 = inlined_call_operand.hbm [shape: f32[2,8,32], index: 4, kind: output, shape index: {}]  }
   0x1   :  { %1445 = sst [smem:[#allocation19_spill]] %s1440_s2 }
   0x2   :  { %1446 = sst [smem:[#allocation20_spill]] %s1441_s3 }
   0x3   :  { %9 = vsyncpa [#allocation3], 0 }
   0x4   :  { %11 = vsyncpa [#allocation3 + $0x1], 0 }
   0x5   :  { %12 = vsyncpa [#allocation6], 0 }
   0x6   :  { %14 = vsyncpa [#allocation6 + $0x1], 0 }
   0x7   :  { %15 = vsyncpa [#allocation9], 0 }
   0x8   :  { %16 = vsyncpa [#allocation4], 0 }
   0x9   :  { %18 = vsyncpa [#allocation4 + $0x1], 0  ;;  %s1239_s15 = smov 0   ;;  %s1241_s16 = smov 0  }
   0xa   :  { %s1243_s17 = smov 0   ;;  %s1245_s18 = smov 0  }
   0xb   :  { %s1247_s19 = smov 0   ;;  %s1249_s20 = smov 0  }
   0xc LB: > { %1447 = sst [smem:[#allocation16_spill]] %s1197_s19  ;;  %s1270_s21 = sadd.s32 4294967295, %s1201_s20   ;;  %s1201_s20 = sphi %s1249_s20, %s24_s20   ;;  %s1197_s19 = sphi %s1247_s19, %s1459_s19   ;;  %s1193_s18 = sphi %s1245_s18, %s1458_s18   ;;  %s1189_s17 = sphi %s1243_s17, %s1462_s17   ;;  %s1185_s16 = sphi %s1241_s16, %s1461_s16   ;;  %s1181_s15 = sphi %s1239_s15, %s1460_s15  }
   0xd   : > { %p840_p0 = scmp.ge.s32.totalorder %s1201_s20, 1  ;;  %p59_p1 = scmp.eq.s32.totalorder %s1270_s21, 0 }
   0xe   : > { %p165_p2 = scmp.lt.s32.totalorder %s1201_s20, 3  ;;  %s1448_s2 = sld [smem:[#allocation19_spill]] }
   0xf   : > { %s1203_s26 = smov [#allocation7]   ;;  %p843_p6 = scmp.ge.s32.totalorder %s1201_s20, 2 }
  0x10   : > { %p1278_p3 = pnand %p840_p0, %p165_p2  ;;  %s178_s27 = sshll.u32 %s1203_s26, 4  ;;  %s179_s27 = int_to_ptr.vmem [resolvable:$true] %s178_s27 }
  0x11   : > { %s1450_s3 = sld [smem:[#allocation20_spill]]  ;;  %s1204_s5 = smov 128  }
  0x12   : > { %p888_p4 = pneg %p1278_p3  ;;  %s1205_s6 = smov 8  }
  0x13   : > { %s1206_s7 = smov [#allocation8]   ;;  %s839_s9 = sadd.s32 4294967294, %s1201_s20  }
  0x14   : > { %s176_s24 = sshll.u32 %s1448_s2, 4  ;;  %p889_p5 = pnand %p888_p4, %p59_p1  ;;  %s177_s24 = int_to_ptr.hbm [resolvable:$true] %s176_s24 }
  0x15   : > { %s192_s8 = sshll.u32 %s1206_s7, 4  ;;  %s36_s10 = sadd.s32 1, %s1197_s19  ;;  %s193_s8 = int_to_ptr.vmem [resolvable:$true] %s192_s8 }
  0x16   : > { %891 = dma.hbm_to_vmem [thread:$0]  (!%p889_p5), %s177_s24, 1536, %s179_s27, [#allocation6], %s1204_s5, %s1204_s5, %s1205_s6  }
  0x17   : > { %s190_s30 = sshll.u32 %s1450_s3, 4  ;;  %p38_p7 = scmp.ge.s32.totalorder %s36_s10, 2  ;;  %s191_s30 = int_to_ptr.hbm [resolvable:$true] %s190_s30 }
  0x18   : > { %894 = dma.hbm_to_vmem [thread:$0]  (!%p889_p5), %s191_s30, 512, %s193_s8, [#allocation9], %s1204_s5, %s1204_s5, %s1205_s6  }
  0x19   : > { %s45_s11 = sadd.s32 1, %s1189_s17  ;;  %p52_p8 = scmp.ne.s32.totalorder %s1189_s17, %s1185_s16 }
  0x1a   : > { %p53_p9 = scmp.eq.s32.totalorder %s1201_s20, 0  ;;  %s1464_s10 = smov (%p38_p7, %s36_s10), 0 }
  0x1b   : > { %1451 = sst [smem:[#allocation17_spill]] %s1464_s10  ;;  %p58_p11 = scmp.ne.s32.totalorder %s1185_s16, %s1181_s15 }
  0x1c   : > { %p1298_p10 = por %p53_p9, %p52_p8  ;;  %s40_s13 = ssub.s32 %s1197_s19, %s1464_s10 }
  0x1d   : > { %p152_p12 = scmp.eq.s32.totalorder %s1270_s21, 1  ;;  %p43_p13 = scmp.eq.s32.totalorder %s40_s13, 0 }
  0x1e   : > { %p1309_p0 = por %p59_p1, %p58_p11  ;;  %p158_p4 = scmp.eq.s32.totalorder %s839_s9, 1 }
  0x1f   : > { %p1313_p2 = por %p152_p12, %p52_p8  ;;  %p908_p7 = scmp.lt.s32.totalorder %s1201_s20, 2 }
  0x20   : > { %s1318_s23 = scalar_select %p43_p13, %s1189_s17, %s45_s11  }
  0x21   : > { %p1320_p5 = por %p158_p4, %p58_p11  ;;  %s206_s26 = sand.u32 1, %s1189_s17  }
  0x22   : > { %1455 = sst [smem:[#allocation18_spill]] %s1318_s23  ;;  %s845_s27 = sshll.u32 %s1197_s19, 3 }
  0x23   : > { %s844_s28 = sshll.u32 %s206_s26, 3  ;;  %s215_s5 = scalar_lea.hbm %s1438_s0, %s845_s27 }
  0x24   : > { %s217_s6 = sshll.u32 %s215_s5, 4  ;;  %s210_s7 = scalar_lea.vmem [#allocation2], %s844_s28  ;;  %s218_s6 = int_to_ptr.hbm [resolvable:$true] %s217_s6 }
  0x25   : > { %s219_s8 = sshll.u32 %s210_s7, 4  ;;  %p896_p8 = pnand %p908_p7, %p1298_p10  ;;  %s220_s8 = int_to_ptr.vmem [resolvable:$true] %s219_s8 }
  0x26   : > { %s234_s13 = scalar_lea.hbm %s1439_s1, %s845_s27  ;;  %s226_s2 = sand.u32 1, %s1201_s20  }
  0x27   : > { %s207_s3 = scalar_lea.sflag [#allocation3], %s206_s26  ;;  %s236_s10 = sshll.u32 %s234_s13, 4  ;;  %s237_s10 = int_to_ptr.hbm [resolvable:$true] %s236_s10 }
  0x28   : > { %898 = dma.hbm_to_vmem [thread:$0]  (!%p896_p8), %s218_s6, 128, %s220_s8, %s207_s3  }
  0x29   : > { %s230_s19 = scalar_lea.vmem [#allocation5], %s844_s28  ;;  %s227_s29 = scalar_lea.sflag [#allocation6], %s226_s2 }
  0x2a   : > { %s238_s23 = sshll.u32 %s230_s19, 4  ;;  %247 = sbr.rel (%p1278_p3) target bundleno = 1089 (0x441), region = 36  ;;  %s239_s23 = int_to_ptr.vmem [resolvable:$true] %s238_s23 }
  0x2b   : > { %901 = dma.hbm_to_vmem [thread:$0]  (!%p896_p8), %s237_s10, 128, %s239_s23, %s227_s29  }
  0x2c   : > { %s1339_s12 = sand.u32 (!%p1278_p3), 1, %s1185_s16  }
  0x2d   : > { %s1342_s27 = sshll.u32 (!%p1278_p3), %s1339_s12, 3  ;;  %s250_s3 = scalar_lea.sflag (!%p1278_p3), [#allocation3], %s1339_s12 }
  0x2e   : > { %s253_s26 = scalar_lea.vmem (!%p1278_p3), [#allocation2], %s1342_s27 }
  0x2f   : > { %1160 = dma.done.wait (%p1309_p0), %s250_s3, 128  }
  0x30   : > { %1162 = vsyncadd (%p1309_p0), %s250_s3, 4294967168  ;;  %s259_s2 = sand.u32 1, %s1270_s21   ;;  %s263_s25 = scalar_lea.vmem [#allocation5], %s1342_s27 }
  0x31   : > { %s260_s19 = scalar_lea.sflag [#allocation6], %s259_s2 }
  0x32   : > { %1164 = dma.done.wait (%p1309_p0), %s260_s19, 128  }
  0x33   : > { %1166 = vsyncadd (%p1309_p0), %s260_s19, 4294967168 }
  0x34   : > { %1168 = dma.done.wait (%p59_p1), [#allocation6], 1536  }
  0x35   : > { %1170 = vsyncadd (%p59_p1), [#allocation6], 4294965760 }
  0x36   : > { %1172 = dma.done.wait (%p59_p1), [#allocation9], 512  }
  0x37   : > { %1174 = vsyncadd (%p59_p1), [#allocation9], 4294966784  ;;  %v339_v0 = vld [vmem:[#allocation7 + $0x38] sm:$0xff]  ;;  %v338_v2 = vld [vmem:[#allocation7 + $0x30] sm:$0xff]  ;;  %vm310_vm0 = vcmask 261120   ;;  %vm397_vm1 = vcmask 64512   ;;  %v389_v21 = vlaneseq }
  0x38   : > { %v309_v1 = vld [vmem:[#allocation7 + $0x18] sm:$0xff]  ;;  %355 = vmatpush.msra.mxu1 %v339_v0  ;;  %v308_v3 = vld [vmem:[#allocation7 + $0x10] sm:$0xff]  ;;  %v337_v4 = vld [vmem:[#allocation7 + $0x28] sm:$0xff]  ;;  %s1207_s21 = smov 104   ;;  %s1208_s10 = smov 120   ;;  %vm667_vm3 = vcmask 130048  }
  0x39   : > { %326 = vmatpush.msra.mxu0 %v309_v1  ;;  %v307_v5 = vld [vmem:[#allocation7 + $0x8] sm:$0xff]  ;;  %v336_v6 = vld [vmem:[#allocation7 + $0x20] sm:$0xff]  ;;  %v305_v8 = vld [vmem:[%s263_s25] sm:$0xff]  ;;  %s1209_s14 = smov 112   ;;  %v390_v23 = vshrl.u32 %v389_v21, 7  ;;  %v394_v24 = vand.u32 127, %v389_v21 }
  0x3a   : > { %356 = vmatpush.msra.mxu1 %v338_v2  ;;  %v306_v7 = vld [vmem:[#allocation7] sm:$0xff]  ;;  %v367_v13 = vld [vmem:[#allocation7 + $0x58] sm:$0xff]  ;;  %v366_v14 = vld [vmem:[#allocation7 + $0x50] sm:$0xff]  ;;  %v1210_v26 = vmov -1e+30   ;;  %s1211_s23 = smov 16  }
  0x3b   : > { %327 = vmatpush.msra.mxu0 %v308_v3  ;;  %v304_v9 = vld [vmem:[%s253_s26] sm:$0xff]  ;;  %380 = vmatpush.msra.mxu2 %v367_v13  ;;  %vm395_vm2 = vcmp.le.s32.totalorder %v394_v24, %v390_v23  ;;  %s1212_s28 = smov 8   ;;  %s1213_s30 = smov 24   ;;  %vm669_vm4 = vcmask 195584  }
  0x3c   : > { %357 = vmatpush.msra.mxu1 %v337_v4  ;;  %v365_v15 = vld [vmem:[#allocation7 + $0x48] sm:$0xff]  ;;  %v364_v16 = vld [vmem:[#allocation7 + $0x40] sm:$0xff]  ;;  %v396_v27 = vsel %vm395_vm2, 0.0, %v1210_v26  ;;  %s871_s5 = sshll.u32 %s1193_s18, 3  ;;  %s303_s9 = scalar_lea.vmem [#allocation10], %s1342_s27 }
  0x3d   : > { %328 = vmatpush.msra.mxu0 %v307_v5  ;;  %381 = vmatpush.msra.mxu2 %v366_v14  ;;  %s711_s8 = scalar_lea.hbm %s1442_s4, %s871_s5  ;;  %s713_s11 = sshll.u32 %s303_s9, 4  ;;  %s714_s11 = int_to_ptr.vmem [resolvable:$true] %s713_s11 }
  0x3e   : > { %358 = vmatpush.msra.mxu1 %v336_v6  ;;  %s715_s13 = sshll.u32 %s711_s8, 4  ;;  %s700_s29 = scalar_lea.sflag [#allocation4], %s1339_s12  ;;  %s716_s13 = int_to_ptr.hbm [resolvable:$true] %s715_s13 }
  0x3f   : > { %329 = vmatpush.msra.mxu0 %v306_v7  ;;  %855 = vmatmul.msk.f32.vlgmr.msra.gmra.mxu1 %vm310_vm0, %v305_v8  ;;  %s1121_s3 = sshra.s32 %s716_s13, 4  ;;  %s1127_s19 = scalar_lea.hbm %s1442_s4, 16  ;;  %s1122_s3 = int_to_ptr.hbm [resolvable:$true] %s1121_s3 }
  0x40   : > { %854 = vmatmul.msk.f32.vlgmr.msra.gmra.mxu0 %vm310_vm0, %v304_v9  ;;  %382 = vmatpush.msra.mxu2 %v365_v15  ;;  %s1123_s26 = scalar_lea.hbm %s1122_s3, 8  ;;  %p1128_p10 = scmp.lt.s32.totalorder %s1122_s3, %s1442_s4 }
  0x41   : > { %p1124_p1 = scmp.ne.s32.totalorder %s1122_s3, %s1123_s26  ;;  %p1129_p11 = scmp.lt.s32.totalorder %s1127_s19, %s1123_s26 }
  0x42   : > { %383 = vmatpush.msra.mxu2 %v364_v16  ;;  %v674_v16 = vld [vmem:[#allocation8 + $0x18] sm:$0xff] }
  0x43   : > { %856 = vmatmul.msk.f32.vlgmr.msra.gmra.mxu2 %vm310_vm0, %v305_v8  ;;  %p1125_p3 = pnand %p1124_p1, %p1313_p2  ;;  %p1130_p12 = por %p1129_p11, %p1128_p10 }
  0x45   : > { %p1126_p9 = pneg %p1125_p3 }
  0x47   : > { %p1131_p13 = pnand %p1130_p12, %p1126_p9 }
  0xbc   : > { %v360_v10 = vpop.f32.mrf.mxu1 }
  0xbd   : > { %v331_v11 = vpop.f32.mrf.mxu0  ;;  %591 = vrot.lane.b32.xlu2 %v360_v10, %s1207_s21  ;;  %460 = vrot.lane.b32.xlu1 %v360_v10, %s1208_s10 }
  0xbe   : > { %v334_v12 = vmul.f32 0.35355338, %v331_v11  ;;  %526 = vrot.lane.b32.xlu0 %v360_v10, %s1209_s14  ;;  %857 = vmatpush.xpose.msk.msra.mxu3 %vm397_vm1, %v360_v10 }
  0xc1   : > { %858 = vmatmul.msk.f32.vlgmr.msra.gmra.mxu3 %vm397_vm1, %v334_v12 }
  0xc5   : > { %589 = vrot.lane.b32.xlu2 %v334_v12, %s1207_s21  ;;  %458 = vrot.lane.b32.xlu1 %v334_v12, %s1208_s10 }
  0xc6   : > { %524 = vrot.lane.b32.xlu0 %v334_v12, %s1209_s14  ;;  %v385_v31 = vpop.f32.mrf.mxu2 }
  0xc7   : > { %453 = vmatpush.msrb.mxu3 %v385_v31 }
 0x117   : > { %v592_v18 = vpop.permute.xlu2 %591 }
 0x11f   : > { %v590_v25 = vpop.permute.xlu2 %589 }
 0x12f   : > { %v461_v17 = vpop.permute.xlu1 %460 }
 0x130   : > { %v527_v19 = vpop.permute.xlu0 %526  ;;  %860 = vmatpush.xpose.msk.msrb.mxu0 %vm397_vm1, %v461_v17  ;;  %v673_v17 = vld [vmem:[#allocation8 + $0x10] sm:$0xff] }
 0x131   : > { %863 = vmatpush.xpose.msk.msrb.mxu2 %vm397_vm1, %v527_v19  ;;  %v671_v19 = vld [vmem:[#allocation8] sm:$0xff] }
 0x134   : > { %866 = vmatpush.xpose.msk.msra.mxu0 %vm397_vm1, %v592_v18  ;;  %v672_v18 = vld [vmem:[#allocation8 + $0x8] sm:$0xff] }
 0x135   : > { %690 = vmatpush.msra.mxu2 %v674_v16 }
 0x137   : > { %v459_v20 = vpop.permute.xlu1 %458  ;;  %691 = vmatpush.msra.mxu2 %v673_v17 }
 0x138   : > { %v525_v22 = vpop.permute.xlu0 %524  ;;  %861 = vmatmul.msk.f32.vlgmr.msrb.gmra.mxu0 %vm397_vm1, %v459_v20 }
 0x139   : > { %864 = vmatmul.msk.f32.vlgmr.msrb.gmra.mxu2 %vm397_vm1, %v525_v22 }
 0x13a   : > { %692 = vmatpush.msra.mxu2 %v672_v18 }
 0x13c   : > { %693 = vmatpush.msra.mxu2 %v671_v19 }
 0x140   : > { %867 = vmatmul.msk.f32.vlgmr.msra.gmra.mxu0 %vm397_vm1, %v590_v25 }
 0x144   : > { %v421_v28 = vpop.f32.mrf.mxu3 }
 0x145   : > { %v422_v29 = vadd.f32 %v421_v28, %v396_v27 }
 0x147   : > { %v424_v30 = vsel %vm397_vm1, %v422_v29, -inf }
 0x148   : > { %425 = vmax.xlane.f32.xlu0 %v424_v30 }
 0x1b5   : > { %v483_v32 = vpop.f32.mrf.mxu0 }
 0x1b6   : > { %v484_v33 = vadd.f32 %v483_v32, %v396_v27 }
 0x1b8   : > { %v486_v34 = vsel %vm397_vm1, %v484_v33, -inf }
 0x1b9   : > { %487 = vmax.xlane.f32.xlu1 %v486_v34 }
 0x1bb   : > { %v426_v35 = vpop.xlane.xlu0 %425 }
 0x1bc   : > { %v427_v36 = vsub.f32 %v422_v29, %v426_v35  ;;  %v549_v37 = vpop.f32.mrf.mxu2 }
 0x1bd   : > { %v550_v38 = vadd.f32 %v549_v37, %v396_v27  ;;  %v614_v41 = vpop.f32.mrf.mxu0 }
 0x1be   : > { %v428_v39 = vmul.f32 1.442695, %v427_v36  ;;  %v615_v42 = vadd.f32 %v614_v41, %v396_v27 }
 0x1bf   : > { %v552_v40 = vsel %vm397_vm1, %v550_v38, -inf }
 0x1c0   : > { %971 = vpow2.f32 %v428_v39  ;;  %553 = vmax.xlane.f32.xlu2 %v552_v40  ;;  %v617_v44 = vsel %vm397_vm1, %v615_v42, -inf }
 0x1c6   : > { %v972_v43 = vpop.eup %971 }
 0x1c7   : > { %v430_v45 = vsel %vm397_vm1, %v972_v43, 0.0 }
 0x1c8   : > { %618 = vmax.xlane.f32.xlu2 %v617_v44  ;;  %431 = vadd.xlane.f32.xlu0 %v430_v45 }
 0x22c   : > { %v488_v46 = vpop.xlane.xlu1 %487 }
 0x22d   : > { %v489_v47 = vsub.f32 %v484_v33, %v488_v46 }
 0x22f   : > { %v490_v48 = vmul.f32 1.442695, %v489_v47 }
 0x231   : > { %973 = vpow2.f32 %v490_v48 }
 0x233   : > { %v554_v49 = vpop.xlane.xlu2 %553 }
 0x234   : > { %v555_v50 = vsub.f32 %v550_v38, %v554_v49 }
 0x236   : > { %v556_v51 = vmul.f32 1.442695, %v555_v50 }
 0x237   : > { %v974_v52 = vpop.eup %973 }
 0x238   : > { %975 = vpow2.f32 %v556_v51  ;;  %v492_v53 = vsel %vm397_vm1, %v974_v52, 0.0 }
 0x239   : > { %493 = vadd.xlane.f32.xlu1 %v492_v53 }
 0x23b   : > { %v619_v54 = vpop.xlane.xlu2 %618  ;;  %v432_v55 = vpop.xlane.xlu0 %431 }
 0x23c   : > { %v620_v56 = vsub.f32 %v615_v42, %v619_v54  ;;  %977 = vrcp.f32 %v432_v55 }
 0x23e   : > { %v976_v57 = vpop.eup %975  ;;  %v621_v58 = vmul.f32 1.442695, %v620_v56 }
 0x23f   : > { %v558_v59 = vsel %vm397_vm1, %v976_v57, 0.0 }
 0x240   : > { %979 = vpow2.f32 %v621_v58  ;;  %559 = vadd.xlane.f32.xlu2 %v558_v59 }
 0x242   : > { %v978_v60 = vpop.eup %977 }
 0x243   : > { %v434_v61 = vmul.f32 %v978_v60, %v972_v43 }
 0x245   : > { %859 = vmatmul.msk.f32.vlgmr.msrb.gmra.mxu3 %vm397_vm1, %v434_v61 }
 0x246   : > { %v980_v62 = vpop.eup %979 }
 0x247   : > { %v623_v63 = vsel %vm397_vm1, %v980_v62, 0.0 }
 0x248   : > { %624 = vadd.xlane.f32.xlu0 %v623_v63 }
 0x252   : > { %498 = vrot.lane.b32.xlu1 %v385_v31, %s1208_s10 }
 0x258   : > { %563 = vrot.lane.b32.xlu2 %v385_v31, %s1209_s14 }
 0x25c   : > { %628 = vrot.lane.b32.xlu0 %v385_v31, %s1207_s21 }
 0x2ac   : > { %v494_v1 = vpop.xlane.xlu1 %493 }
 0x2b3   : > { %v560_v0 = vpop.xlane.xlu2 %559 }
 0x2b4   : > { %981 = vrcp.f32 %v560_v0 }
 0x2b5   : > { %983 = vrcp.f32 %v494_v1 }
 0x2ba   : > { %v982_v2 = vpop.eup %981 }
 0x2bb   : > { %v562_v3 = vmul.f32 %v982_v2, %v976_v57  ;;  %v564_v4 = vpop.permute.xlu2 %563  ;;  %v984_v5 = vpop.eup %983 }
 0x2bc   : > { %584 = vmatpush.msra.mxu3 %v564_v4  ;;  %v625_v6 = vpop.xlane.xlu0 %624  ;;  %v496_v8 = vmul.f32 %v984_v5, %v974_v52 }
 0x2bd   : > { %865 = vmatmul.msk.f32.vlgmr.msra.gmra.mxu3 %vm397_vm1, %v562_v3  ;;  %985 = vrcp.f32 %v625_v6 }
 0x2c3   : > { %v986_v9 = vpop.eup %985 }
 0x2c4   : > { %v499_v7 = vpop.permute.xlu1 %498  ;;  %v627_v10 = vmul.f32 %v986_v9, %v980_v62 }
 0x2c5   : > { %519 = vmatpush.msrb.mxu1 %v499_v7 }
 0x2c6   : > { %862 = vmatmul.msk.f32.vlgmr.msrb.gmra.mxu1 %vm397_vm1, %v496_v8 }
 0x2c8   : > { %v455_v12 = vpop.f32.mrf.mxu3 }
 0x2ce   : > { %v629_v11 = vpop.permute.xlu0 %628 }
 0x2cf   : > { %649 = vmatpush.msra.mxu1 %v629_v11 }
 0x2d0   : > { %868 = vmatmul.msk.f32.vlgmr.msra.gmra.mxu1 %vm397_vm1, %v627_v10 }
 0x340   : > { %v586_v13 = vpop.f32.mrf.mxu3 }
 0x341   : > { %659 = vrot.lane.b32.xlu0 %v586_v13, %s1211_s23 }
 0x343   : > { %v521_v14 = vpop.f32.mrf.mxu1 }
 0x344   : > { %655 = vrot.lane.b32.xlu1 %v521_v14, %s1212_s28 }
 0x34d   : > { %v651_v15 = vpop.f32.mrf.mxu1 }
 0x34e   : > { %663 = vrot.lane.b32.xlu2 %v651_v15, %s1213_s30 }
 0x3a8   : > { %v664_v23 = vpop.permute.xlu2 %663 }
 0x3b3   : > { %v660_v21 = vpop.permute.xlu0 %659 }
 0x3b6   : > { %v656_v20 = vpop.permute.xlu1 %655 }
 0x3b7   : > { %v666_v22 = vsel %vm397_vm1, %v455_v12, %v656_v20 }
 0x3b8   : > { %v668_v24 = vsel %vm667_vm3, %v666_v22, %v660_v21 }
 0x3b9   : > { %v670_v25 = vsel %vm669_vm4, %v668_v24, %v664_v23 }
 0x3ba   : > { %869 = vmatmul.msk.f32.vlgmr.msra.gmra.mxu2 %vm310_vm0, %v670_v25 }
 0x43d   : > { %v695_v26 = vpop.f32.mrf.mxu2 }
 0x43e   : > { %698 = vst.msk [vmem:[%s303_s9] sm:$0xff] %vm310_vm0, %v695_v26 }
 0x43f   : > { %1134 = shalt.err (!%p1131_p13)
}
 0x440   : > { %886 = dma.vmem_to_hbm [thread:$0]  (%p1313_p2), %s714_s11, 128, %s716_s13, %s700_s29  }
 0x441 PF: > { %s727_s12 = sand.u32 1, %s1181_s15   ;;  %p903_p0 = pnand %p843_p6, %p1320_p5 }
 0x442   : > { %s728_s21 = scalar_lea.sflag [#allocation4], %s727_s12 }
 0x443   : > { %p904_p4 = pneg %p903_p0 }
 0x445   : > { %1176 = dma.done.wait (%p904_p4), %s728_s21, 128  }
 0x446   : > { %1178 = vsyncadd (%p904_p4), %s728_s21, 4294967168  ;;  %s24_s20 = sadd.s32 1, %s1201_s20   ;;  %s1457_s10 = sld [smem:[#allocation18_spill]] }
 0x447   : > { %p21_p7 = scmp.ge.s32.totalorder %s24_s20, 4   ;;  %s1458_s18 = sld [smem:[#allocation16_spill]] }
 0x448   : > { %s1459_s19 = sld [smem:[#allocation17_spill]]  ;;  %s1460_s15 = smov %s1185_s16 }
 0x449   : > { %s1461_s16 = smov %s1189_s17  ;;  %23 = sbr.rel (!%p21_p7) target bundleno = 12 (0xc), region = 104 }
 0x44c   : > { %s1462_s17 = smov %s1457_s10 }
 0x44e   :  { %734 = vsyncpa [#allocation3], 1 }
 0x44f   :  { %736 = vsyncpa [#allocation3 + $0x1], 1 }
 0x450   :  { %737 = vsyncpa [#allocation6], 1 }
 0x451   :  { %739 = vsyncpa [#allocation6 + $0x1], 1 }
 0x452   :  { %740 = vsyncpa [#allocation9], 1 }
 0x453   :  { %741 = vsyncpa [#allocation4], 1 }
 0x454   :  { %743 = vsyncpa [#allocation4 + $0x1], 1 }

</bundles_post_ra>
